<compile_context>
chip_gen: v7x
topology: tpu7x:2x2x1
jax: 0.10.0
libtpu: 0.0.40
codegen_flags: <defaults>
</compile_context>

<pallas_src>
import jax
import jax.numpy as jnp
from jax.experimental import pallas as pl
from jax.experimental.pallas import tpu as pltpu


def _pick_batch_block(batch, max_block=8):
    """Largest batch block <= max_block that divides `batch`.

    Either the block covers the whole batch (block dims == array dims, always
    legal) or, when tiling, prefer a multiple-of-8 divisor so second-to-last
    block dims stay (8,128)-friendly.
    """
    if batch <= max_block:
        return batch
    for tb in range(max_block, 0, -1):
        if batch % tb == 0 and (tb % 8 == 0):
            return tb
    return batch


def state_transition(slot_seq, slot_lens, intent_emb, params,
                     num_layers=1, cell='LSTM', max_batch_block=8):
    """Pallas TPU forward for StateTransition (eval mode; dropout == identity)."""
    B, S, Ds = slot_seq.shape
    Di = intent_emb.shape[1]
    H = params['w_aff'].shape[0]

    # Collapse the four parameter tensors into two VMEM DMAs.
    w_cat = jnp.concatenate([params['w_attn'].astype(jnp.float32),
                             params['w_aff'].astype(jnp.float32)], axis=0)   # [Di+H, Ds]
    b_cat = jnp.concatenate([params['b_attn'].astype(jnp.float32),
                             params['b_aff'].astype(jnp.float32)], axis=1)   # [1, Di+H]

    lens_i32 = slot_lens.astype(jnp.int32).reshape(B)   # scalar-prefetch -> SMEM

    TB = _pick_batch_block(B, max_batch_block)
    num_blocks = B // TB

    def kernel(lens_ref, slot_ref, intent_ref, w_ref, b_ref, h_ref, c_ref):
        i = pl.program_id(0)

        # Up-cast inside the kernel so the HBM->VMEM DMA moves the source dtype.
        slot = slot_ref[...].astype(jnp.float32)          # [TB, S, Ds]
        intent = intent_ref[...].astype(jnp.float32)      # [TB, Di]
        w_all = w_ref[...]                                # [Di+H, Ds]
        b_all = b_ref[...]                                # [1, Di+H]
        w_attn, w_aff = w_all[:Di, :], w_all[Di:, :]      # [Di,Ds], [H,Ds]
        b_attn, b_aff = b_all[:, :Di], b_all[:, Di:]      # [1,Di],  [1,H]

        # --- fused attn-linear + intent reduction ---------------------------
        # weights[b,s] = sum_d slot[b,s,d] * v[b,d] + intent[b,:].b_attn
        v = jax.lax.dot_general(
            intent, w_attn, dimension_numbers=(((1,), (0,)), ((), ())),
            preferred_element_type=jnp.float32)                       # [TB, Ds]
        c0 = jnp.sum(intent * b_attn, axis=-1, keepdims=True)         # [TB, 1]
        weights = jnp.sum(slot * v[:, None, :], axis=-1) + c0         # [TB, S]

        # --- length mask built from SMEM scalars ----------------------------
        bpos = jax.lax.broadcasted_iota(jnp.int32, (TB, S), 0)
        spos = jax.lax.broadcasted_iota(jnp.int32, (TB, S), 1)
        lens_blk = jnp.zeros((TB, S), jnp.int32)
        for b in range(TB):                                 # static unroll (TB small)
            lens_blk = jnp.where(bpos == b, lens_ref[i * TB + b], lens_blk)
        weights = jnp.where(spos < lens_blk, weights, jnp.float32(-1e8))

        # --- softmax over S (stable; approx reciprocal -> EUP slot) ---------
        w_max = jnp.max(weights, axis=-1, keepdims=True)
        e = jnp.exp(weights - w_max)
        a = e * pl.reciprocal(jnp.sum(e, axis=-1, keepdims=True), approx=True)

        # --- context pooling + affine + tanh --------------------------------
        # (kept as VPU mul + reduce: negligible at S=8, avoids degenerate
        #  batched-matvec lowering)
        conxt = jnp.sum(a[:, :, None] * slot, axis=1)                 # [TB, Ds]
        h = jnp.tanh(jax.lax.dot_general(
            conxt, w_aff, dimension_numbers=(((1,), (1,)), ((), ())),
            preferred_element_type=jnp.float32) + b_aff)              # [TB, H]

        # PyTorch early-return (sum(slot_lens)==0 -> zero state), folded in-kernel.
        total = lens_ref[0]
        for b in range(1, B):                               # full-batch sum from SMEM
            total = total + lens_ref[b]
        h = h * (total > 0).astype(jnp.float32)

        # Replicated h and zero c are emitted directly (no post-kernel XLA ops).
        for l in range(num_layers):
            h_ref[l] = h.astype(h_ref.dtype)
        c_ref[...] = jnp.zeros_like(c_ref)

    grid_spec = pltpu.PrefetchScalarGridSpec(
        num_scalar_prefetch=1,                 # slot_lens -> SMEM
        grid=(num_blocks,),
        in_specs=[
            pl.BlockSpec((TB, S, Ds), lambda i, lens: (i, 0, 0)),
            pl.BlockSpec((TB, Di), lambda i, lens: (i, 0)),
            pl.BlockSpec((Di + H, Ds), lambda i, lens: (0, 0)),
            pl.BlockSpec((1, Di + H), lambda i, lens: (0, 0)),
        ],
        out_specs=[
            pl.BlockSpec((num_layers, TB, H), lambda i, lens: (0, i, 0)),
            pl.BlockSpec((num_layers, TB, H), lambda i, lens: (0, i, 0)),
        ],
    )

    h, c = pl.pallas_call(
        kernel,
        out_shape=(jax.ShapeDtypeStruct((num_layers, B, H), jnp.float32),
                   jax.ShapeDtypeStruct((num_layers, B, H), jnp.float32)),
        grid_spec=grid_spec,
        compiler_params=pltpu.CompilerParams(
            dimension_semantics=("parallel",)),
    )(lens_i32, slot_seq, intent_emb, w_cat, b_cat)

    if cell.upper() == 'LSTM':
        return h, c
    return h


def _reference(slot_seq, slot_lens, intent_emb, params, num_layers=1):
    # Pure-JAX reference mirroring the PyTorch forward (eval mode, no dropout).
    B, S, Ds = slot_seq.shape
    attn_out = slot_seq @ params['w_attn'].T + params['b_attn'][0]
    weights = jnp.einsum('bse,be->bs', attn_out, intent_emb)
    mask = jnp.arange(S)[None, :] < slot_lens[:, None]
    weights = jnp.where(mask, weights, -1e8)
    a = jax.nn.softmax(weights, axis=-1)
    conxt = jnp.einsum('bs,bsd->bd', a, slot_seq)
    h = jnp.tanh(conxt @ params['w_aff'].T + params['b_aff'][0])
    h = jnp.where(jnp.sum(slot_lens) == 0, jnp.zeros_like(h), h)
    h = jnp.broadcast_to(h[None], (num_layers, B, h.shape[-1]))
    return h, jnp.zeros_like(h)


if __name__ == "__main__":
    B, S = 2, 8
    slot_dim, intent_dim, hidden_size = 32, 16, 32
    num_layers = 1

    key = jax.random.PRNGKey(0)
    k1, k2, k3, k4, k5, k6 = jax.random.split(key, 6)

    params = {
        'w_attn': jax.random.normal(k1, (intent_dim, slot_dim), jnp.float32) * 0.1,
        'b_attn': jax.random.normal(k2, (1, intent_dim), jnp.float32) * 0.1,
        'w_aff': jax.random.normal(k3, (hidden_size, slot_dim), jnp.float32) * 0.1,
        'b_aff': jax.random.normal(k4, (1, hidden_size), jnp.float32) * 0.1,
    }

    slot_seq = jax.random.normal(k5, (B, S, slot_dim), jnp.float32)
    intent_emb = jax.random.normal(k6, (B, intent_dim), jnp.float32)
    slot_lens = jnp.array([5, 0], dtype=jnp.int32)

    h, c = state_transition(slot_seq, slot_lens, intent_emb, params,
                            num_layers=num_layers, cell='LSTM')
    jax.block_until_ready((h, c))

    h_ref, c_ref = _reference(slot_seq, slot_lens, intent_emb, params, num_layers)
    assert h.shape == (num_layers, B, hidden_size)
    assert c.shape == (num_layers, B, hidden_size)
    # Tolerance covers the fused-contraction reordering and the approx (EUP)
    # reciprocal in the softmax normalization.
    assert jnp.allclose(h, h_ref, atol=1e-3, rtol=1e-3)
    assert jnp.allclose(c, c_ref)

    # Exercise the folded "sum(slot_lens) == 0 -> zero state" path.
    zero_lens = jnp.zeros((B,), dtype=jnp.int32)
    h0, c0 = state_transition(slot_seq, zero_lens, intent_emb, params,
                              num_layers=num_layers, cell='LSTM')
    jax.block_until_ready((h0, c0))
    assert jnp.allclose(h0, jnp.zeros_like(h0))
    assert jnp.allclose(c0, jnp.zeros_like(c0))

    print("KERNEL_OK")
</pallas_src>

<mosaic_0001>
module attributes {stable_mosaic.version = 11 : i64} {
  func.func @kernel(%arg0: i32, %arg1: memref<2xi32, #tpu.memory_space<smem>>, %arg2: memref<2x8x32xf32, #tpu.memory_space<vmem>>, %arg3: memref<2x16xf32, #tpu.memory_space<vmem>>, %arg4: memref<48x32xf32, #tpu.memory_space<vmem>>, %arg5: memref<1x48xf32, #tpu.memory_space<vmem>>, %arg6: memref<1x2x32xf32, #tpu.memory_space<vmem>>, %arg7: memref<1x2x32xf32, #tpu.memory_space<vmem>>) attributes {dimension_semantics = [#tpu.dimension_semantics<parallel>], iteration_bounds = array<i64: 1>, scalar_prefetch = 1 : i64, scratch_operands = 0 : i64, tpu.core_type = #tpu.core_type<tc>, window_params = [{transform_indices = @transform_0, window_bounds = array<i64: 2, 8, 32>}, {transform_indices = @transform_1, window_bounds = array<i64: 2, 16>}, {pipeline_mode = #tpu.pipeline_mode<synchronous>, transform_indices = @transform_2, window_bounds = array<i64: 48, 32>}, {pipeline_mode = #tpu.pipeline_mode<synchronous>, transform_indices = @transform_3, window_bounds = array<i64: 1, 48>}, {transform_indices = @transform_4, window_bounds = array<i64: 1, 2, 32>}, {transform_indices = @transform_5, window_bounds = array<i64: 1, 2, 32>}]} {
    %c0 = arith.constant 0 : index
    %c0_0 = arith.constant 0 : index
    %c0_1 = arith.constant 0 : index
    %0 = vector.load %arg2[%c0, %c0_0, %c0_1] : memref<2x8x32xf32, #tpu.memory_space<vmem>>, vector<2x8x32xf32>
    %c0_2 = arith.constant 0 : index
    %c0_3 = arith.constant 0 : index
    %1 = vector.load %arg3[%c0_2, %c0_3] : memref<2x16xf32, #tpu.memory_space<vmem>>, vector<2x16xf32>
    %c0_4 = arith.constant 0 : index
    %c0_5 = arith.constant 0 : index
    %2 = vector.load %arg4[%c0_4, %c0_5] : memref<48x32xf32, #tpu.memory_space<vmem>>, vector<48x32xf32>
    %c0_6 = arith.constant 0 : index
    %c0_7 = arith.constant 0 : index
    %3 = vector.load %arg5[%c0_6, %c0_7] : memref<1x48xf32, #tpu.memory_space<vmem>>, vector<1x48xf32>
    %4 = vector.extract_strided_slice %2 {offsets = [0, 0], sizes = [16, 32], strides = [1, 1]} : vector<48x32xf32> to vector<16x32xf32>
    %5 = vector.extract_strided_slice %2 {offsets = [16, 0], sizes = [32, 32], strides = [1, 1]} : vector<48x32xf32> to vector<32x32xf32>
    %6 = vector.extract_strided_slice %3 {offsets = [0, 0], sizes = [1, 16], strides = [1, 1]} : vector<1x48xf32> to vector<1x16xf32>
    %7 = vector.extract_strided_slice %3 {offsets = [0, 16], sizes = [1, 32], strides = [1, 1]} : vector<1x48xf32> to vector<1x32xf32>
    %cst = arith.constant dense<0.000000e+00> : vector<2x32xf32>
    %8 = tpu.matmul %1, %4, %cst {dimension_numbers = #tpu.dot_dimension_numbers<[1], [0], [0], [1], [0, 0, 1, 1], [], []>} : vector<2x16xf32>, vector<16x32xf32>, vector<2x32xf32> -> vector<2x32xf32>
    %9 = vector.broadcast %6 : vector<1x16xf32> to vector<2x16xf32>
    %10 = arith.mulf %1, %9 : vector<2x16xf32>
    %cst_8 = arith.constant dense<0.000000e+00> : vector<2xf32>
    %11 = vector.multi_reduction <add>, %10, %cst_8 [1] : vector<2x16xf32> to vector<2xf32>
    %12 = vector.shape_cast %11 : vector<2xf32> to vector<2x1xf32>
    %13 = vector.shape_cast %8 : vector<2x32xf32> to vector<2x1x32xf32>
    %14 = vector.broadcast %13 : vector<2x1x32xf32> to vector<2x8x32xf32>
    %15 = arith.mulf %0, %14 : vector<2x8x32xf32>
    %cst_9 = arith.constant dense<0.000000e+00> : vector<2x8xf32>
    %16 = vector.multi_reduction <add>, %15, %cst_9 [2] : vector<2x8x32xf32> to vector<2x8xf32>
    %17 = vector.broadcast %12 : vector<2x1xf32> to vector<2x8xf32>
    %18 = arith.addf %16, %17 : vector<2x8xf32>
    %19 = tpu.iota {dimensions = array<i32: 0>} : vector<2x8xi32>
    %20 = tpu.iota {dimensions = array<i32: 1>} : vector<2x8xi32>
    %c0_i32 = arith.constant 0 : i32
    %21 = vector.broadcast %c0_i32 : i32 to vector<2x8xi32>
    %c0_i32_10 = arith.constant 0 : i32
    %22 = vector.broadcast %c0_i32_10 : i32 to vector<2x8xi32>
    %23 = arith.cmpi eq, %19, %22 : vector<2x8xi32>
    %c2_i32 = arith.constant 2 : i32
    %24 = arith.muli %arg0, %c2_i32 : i32
    %c0_i32_11 = arith.constant 0 : i32
    %25 = arith.addi %24, %c0_i32_11 : i32
    %26 = arith.index_cast %25 : i32 to index
    %27 = memref.load %arg1[%26] : memref<2xi32, #tpu.memory_space<smem>>
    %28 = vector.broadcast %27 : i32 to vector<2x8xi32>
    %29 = arith.select %23, %28, %21 : vector<2x8xi1>, vector<2x8xi32>
    %c1_i32 = arith.constant 1 : i32
    %30 = vector.broadcast %c1_i32 : i32 to vector<2x8xi32>
    %31 = arith.cmpi eq, %19, %30 : vector<2x8xi32>
    %c2_i32_12 = arith.constant 2 : i32
    %32 = arith.muli %arg0, %c2_i32_12 : i32
    %c1_i32_13 = arith.constant 1 : i32
    %33 = arith.addi %32, %c1_i32_13 : i32
    %34 = arith.index_cast %33 : i32 to index
    %35 = memref.load %arg1[%34] : memref<2xi32, #tpu.memory_space<smem>>
    %36 = vector.broadcast %35 : i32 to vector<2x8xi32>
    %37 = arith.select %31, %36, %29 : vector<2x8xi1>, vector<2x8xi32>
    %38 = arith.cmpi slt, %20, %37 : vector<2x8xi32>
    %cst_14 = arith.constant -1.000000e+08 : f32
    %39 = vector.broadcast %cst_14 : f32 to vector<2x8xf32>
    %40 = arith.select %38, %18, %39 : vector<2x8xi1>, vector<2x8xf32>
    %cst_15 = arith.constant dense<0xFF800000> : vector<2xf32>
    %41 = vector.multi_reduction <maximumf>, %40, %cst_15 [1] : vector<2x8xf32> to vector<2xf32>
    %42 = vector.shape_cast %41 : vector<2xf32> to vector<2x1xf32>
    %43 = vector.broadcast %42 : vector<2x1xf32> to vector<2x8xf32>
    %44 = arith.subf %40, %43 : vector<2x8xf32>
    %45 = math.exp %44 : vector<2x8xf32>
    %cst_16 = arith.constant dense<0.000000e+00> : vector<2xf32>
    %46 = vector.multi_reduction <add>, %45, %cst_16 [1] : vector<2x8xf32> to vector<2xf32>
    %47 = vector.shape_cast %46 : vector<2xf32> to vector<2x1xf32>
    %48 = tpu.reciprocal %47 {approx = true} : vector<2x1xf32> -> vector<2x1xf32>
    %49 = vector.broadcast %48 : vector<2x1xf32> to vector<2x8xf32>
    %50 = arith.mulf %45, %49 : vector<2x8xf32>
    %51 = vector.shape_cast %50 : vector<2x8xf32> to vector<2x8x1xf32>
    %52 = vector.broadcast %51 : vector<2x8x1xf32> to vector<2x8x32xf32>
    %53 = arith.mulf %52, %0 : vector<2x8x32xf32>
    %cst_17 = arith.constant dense<0.000000e+00> : vector<2x32xf32>
    %54 = vector.multi_reduction <add>, %53, %cst_17 [1] : vector<2x8x32xf32> to vector<2x32xf32>
    %cst_18 = arith.constant dense<0.000000e+00> : vector<2x32xf32>
    %55 = tpu.matmul %54, %5, %cst_18 {dimension_numbers = #tpu.dot_dimension_numbers<[1], [1], [0], [0], [0, 0, 1, 0], [], []>} : vector<2x32xf32>, vector<32x32xf32>, vector<2x32xf32> -> vector<2x32xf32>
    %56 = vector.broadcast %7 : vector<1x32xf32> to vector<2x32xf32>
    %57 = arith.addf %55, %56 : vector<2x32xf32>
    %58 = math.tanh %57 : vector<2x32xf32>
    %c0_19 = arith.constant 0 : index
    %59 = memref.load %arg1[%c0_19] : memref<2xi32, #tpu.memory_space<smem>>
    %c1 = arith.constant 1 : index
    %60 = memref.load %arg1[%c1] : memref<2xi32, #tpu.memory_space<smem>>
    %61 = arith.addi %59, %60 : i32
    %c0_i32_20 = arith.constant 0 : i32
    %62 = arith.cmpi sgt, %61, %c0_i32_20 : i32
    %63 = arith.extui %62 : i1 to i32
    %64 = arith.sitofp %63 : i32 to f32
    %65 = vector.broadcast %64 : f32 to vector<2x32xf32>
    %66 = arith.mulf %58, %65 : vector<2x32xf32>
    %c0_21 = arith.constant 0 : index
    %c0_22 = arith.constant 0 : index
    %c0_23 = arith.constant 0 : index
    %67 = vector.load %arg6[%c0_21, %c0_22, %c0_23] : memref<1x2x32xf32, #tpu.memory_space<vmem>>, vector<1x2x32xf32>
    %68 = vector.shape_cast %67 : vector<1x2x32xf32> to vector<2x32xf32>
    %69 = vector.shape_cast %66 : vector<2x32xf32> to vector<1x2x32xf32>
    tpu.vector_store %arg6[%c0_21, %c0_22, %c0_23], %69 {strides = array<i32>} : memref<1x2x32xf32, #tpu.memory_space<vmem>>, vector<1x2x32xf32>,
    %cst_24 = arith.constant 0.000000e+00 : f32
    %70 = vector.broadcast %cst_24 : f32 to vector<1x2x32xf32>
    %c0_25 = arith.constant 0 : index
    %c0_26 = arith.constant 0 : index
    %c0_27 = arith.constant 0 : index
    %71 = vector.load %arg7[%c0_25, %c0_26, %c0_27] : memref<1x2x32xf32, #tpu.memory_space<vmem>>, vector<1x2x32xf32>
    tpu.vector_store %arg7[%c0_25, %c0_26, %c0_27], %70 {strides = array<i32>} : memref<1x2x32xf32, #tpu.memory_space<vmem>>, vector<1x2x32xf32>,
    return
  }
  func.func @transform_0(%arg0: i32, %arg1: memref<2xi32, #tpu.memory_space<smem>>) -> (i32, i32, i32) {
    %c0_i32 = arith.constant 0 : i32
    %c0_i32_0 = arith.constant 0 : i32
    %c0_i32_1 = arith.constant 0 : i32
    return %arg0, %c0_i32, %c0_i32_0 : i32, i32, i32
  }
  func.func @transform_1(%arg0: i32, %arg1: memref<2xi32, #tpu.memory_space<smem>>) -> (i32, i32) {
    %c0_i32 = arith.constant 0 : i32
    %c0_i32_0 = arith.constant 0 : i32
    return %arg0, %c0_i32 : i32, i32
  }
  func.func @transform_2(%arg0: i32, %arg1: memref<2xi32, #tpu.memory_space<smem>>) -> (i32, i32) {
    %c0_i32 = arith.constant 0 : i32
    %c0_i32_0 = arith.constant 0 : i32
    %c0_i32_1 = arith.constant 0 : i32
    return %c0_i32, %c0_i32_0 : i32, i32
  }
  func.func @transform_3(%arg0: i32, %arg1: memref<2xi32, #tpu.memory_space<smem>>) -> (i32, i32) {
    %c0_i32 = arith.constant 0 : i32
    %c0_i32_0 = arith.constant 0 : i32
    %c0_i32_1 = arith.constant 0 : i32
    return %c0_i32, %c0_i32_0 : i32, i32
  }
  func.func @transform_4(%arg0: i32, %arg1: memref<2xi32, #tpu.memory_space<smem>>) -> (i32, i32, i32) {
    %c0_i32 = arith.constant 0 : i32
    %c0_i32_0 = arith.constant 0 : i32
    %c0_i32_1 = arith.constant 0 : i32
    return %c0_i32, %arg0, %c0_i32_0 : i32, i32, i32
  }
  func.func @transform_5(%arg0: i32, %arg1: memref<2xi32, #tpu.memory_space<smem>>) -> (i32, i32, i32) {
    %c0_i32 = arith.constant 0 : i32
    %c0_i32_0 = arith.constant 0 : i32
    %c0_i32_1 = arith.constant 0 : i32
    return %c0_i32, %arg0, %c0_i32_0 : i32, i32, i32
  }
}

</mosaic_0001>

<bundles_post_ra>
// kernel: tpu_custom_call.1
= control target key start
LH: loop header
LB: loop body
LE: loop exit
PB: predicated region body
PF: predicated region fallthrough
CT: control target
= control target key end

     0   :  { %s662_s0 = inlined_call_operand.vmem [shape: s32[2], index: 0, kind: input, shape index: {}]   ;;  %s663_s1 = inlined_call_operand.vmem [shape: f32[2,8,32], index: 1, kind: input, shape index: {}]   ;;  %s664_s2 = inlined_call_operand.vmem [shape: f32[2,16], index: 2, kind: input, shape index: {}]   ;;  %s665_s3 = inlined_call_operand.vmem [shape: f32[48,32], index: 3, kind: input, shape index: {}]   ;;  %s666_s4 = inlined_call_operand.vmem [shape: f32[1,48], index: 4, kind: input, shape index: {}]   ;;  %s667_s5 = inlined_call_operand.hbm [shape: f32[1,2,32], index: 5, kind: output, shape index: {0}]   ;;  %s668_s6 = inlined_call_operand.hbm [shape: f32[1,2,32], index: 6, kind: output, shape index: {1}]  }
   0x1   :  { %s12_s23 = sshll.u32 %s662_s0, 4  ;;  %s13_s23 = int_to_ptr.vmem [resolvable:$true] %s12_s23 }
   0x2   :  { %s448_s24 = scalar_lea.vmem %s13_s23, 16  ;;  %p453_p1 = scmp.lt.s32.totalorder %s13_s23, %s13_s23 }
   0x3   :  { %p449_p0 = scmp.ne.s32.totalorder %s13_s23, %s448_s24  ;;  %p454_p2 = scmp.lt.s32.totalorder %s448_s24, %s448_s24 }
   0x5   :  { %p455_p3 = por %p454_p2, %p453_p1 }
   0x7   :  { %p456_p4 = pnand %p455_p3, %p449_p0 }
   0x9   :  { %459 = shalt.err (!%p456_p4)  }
   0xa   :  { %s510_s25 = smov [#allocation3]  }
   0xb   :  { %15 = dma.vmem_to_smem %s13_s23, 16, %s510_s25, [#allocation2] }
   0xc   :  { %504 = dma.done.wait [#allocation2], 16 }
   0xd   :  { %505 = vsyncadd [#allocation2], 4294967280 }
   0xe   :  { %17 = sfence }
   0xf   :  { %18 = vsyncpa [#allocation5], 0  ;;  %v31_v0 = vld [vmem:[%s665_s3] sm:$0xff]  ;;  %v32_v1 = vld [vmem:[%s665_s3 + $0x8] sm:$0xff]  ;;  %v511_v2 = vmov 0.0|0.0   ;;  %vm512_vm0 = vmmov 0  }
  0x10   :  { %420 = vmatprep.subr.bf16.mxu0 %v511_v2  ;;  %v421_v3 = vpack.c.bf16 %v32_v1, %v31_v0  ;;  %v513_v4 = vmov 0.0  }
  0x11   :  { %406 = vmatprep.mubr.msk.f32.mxu0 %vm512_vm0, %v513_v4 }
  0x12   :  { %19 = vsyncpa [#allocation7], 0  ;;  %423 = vmatprep.subr.bf16.mxu1 %v511_v2  ;;  %417 = vmatprep.mubr.msk.f32.mxu1 %vm512_vm0, %v513_v4  ;;  %v30_v5 = vld [vmem:[%s664_s2] sm:$0x3]  ;;  %vm38_vm1 = vcmask 130048   ;;  %vm119_vm2 = vcmask 123904   ;;  %v127_v11 = vlaneseq }
  0x13   :  { %422 = vmatpush3.bf16.msra.mxu0 %v421_v3  ;;  %v573_v6 = vld [vmem:[%s666_s4] ss:$0 sm:$0xff]  ;;  %v514_v9 = vmov 1966171168   ;;  %vm158_vm3 = vcmask 261120   ;;  %v591_v24 = vld [vmem:[%s663_s1 + $0x8] sm:$0xff] }
  0x14   :  { %v118_v7 = vmul.f32 %v573_v6, %v30_v5  ;;  %v125_v10 = vunpack.c.l.s4 %v514_v9  ;;  %v576_v13 = vshrl.u32 %v127_v11, 7  ;;  %v585_v21 = vld [vmem:[%s663_s1] sm:$0xff]  ;;  %v515_v30 = vmov 0   ;;  %s600_s1 = sld [smem:[#allocation3]]  ;;  %s602_s11 = sld [smem:[#allocation3 + $0x1]]  ;;  %v33_v58 = vld [vmem:[%s665_s3 + $0x10] sm:$0xff]  ;;  %vm425_vm9 = vmpackc.low %vm158_vm3, %vm158_vm3 }
  0x15   :  { %440 = vset.pattern.permute.xlu1 %v515_v30  ;;  %441 = vset.pattern.permute.xlu0 %v515_v30  ;;  %v181_v40 = vand.u32 127, %v127_v11  ;;  %vm209_vm6 = vcmask 1041409   ;;  %vm213_vm8 = vcmask 58368   ;;  %v34_v59 = vld [vmem:[%s665_s3 + $0x18] sm:$0xff]  ;;  %v35_v63 = vld [vmem:[%s665_s3 + $0x20] sm:$0xff]  ;;  %v36_v0 = vld [vmem:[%s665_s3 + $0x28] sm:$0xff] }
  0x16   :  { %407 = vmatmul.mubr.msk.f32.vlgmr.msra.gmra.mrb[0].mxu0 %vm38_vm1, %v30_v5  ;;  %v120_v8 = vsel %vm119_vm2, %v118_v7, 0.0  ;;  %v126_v12 = vunpack.c.0.s8 %v125_v10  ;;  %v580_v18 = vsub.s32 0, %v576_v13  ;;  %v172_v32 = vsub.s32 1, %v576_v13  ;;  %s516_s20 = smov 112   ;;  %s517_s3 = smov [#allocation6]  }
  0x17   :  { %121 = vadd.xlane.f32.xlu0 %v120_v8  ;;  %vm182_vm4 = vcmp.eq.s32.totalorder %v576_v13, 0  ;;  %vm187_vm5 = vcmp.eq.s32.totalorder %v576_v13, 1  ;;  %v203_v43 = vsub.s32 %v181_v40, %v576_v13  ;;  %v424_v60 = vpack.c.bf16 %v34_v59, %v33_v58  ;;  %s373_s21 = sshll.u32 %s517_s3, 4  ;;  %s374_s21 = int_to_ptr.vmem [resolvable:$true] %s373_s21 }
  0x18   :  { %v129_v14 = vsub.s32 %v126_v12, %v576_v13  ;;  %v428_v3 = vpack.c.bf16 %v36_v0, %v35_v63  ;;  %vm354_vm10 = vcmask 254976   ;;  %s460_s22 = scalar_lea.vmem %s374_s21, 32  ;;  %p465_p6 = scmp.lt.s32.totalorder %s374_s21, %s374_s21 }
  0x19   :  { %426 = vmatpush3.bf16.xpose.msk.msra.mxu1 %vm425_vm9, %v424_v60  ;;  %356 = vst.msk [vmem:[#allocation6] sm:$0x3] %vm354_vm10, %v513_v4  ;;  %p461_p5 = scmp.ne.s32.totalorder %s374_s21, %s460_s22  ;;  %p466_p7 = scmp.lt.s32.totalorder %s460_s22, %s460_s22 }
  0x1a   :  { %v185_v39 = vstv %s600_s1  ;;  %v190_v42 = vstv %s602_s11  ;;  %427 = vmatprep.subr.bf16.mxu1 %v511_v2 }
  0x1b   :  { %v186_v41 = vsel %vm182_vm4, %v185_v39, 0  ;;  %p467_p8 = por %p466_p7, %p465_p6 }
  0x1c   :  { %v191_v45 = vsel %vm187_vm5, %v190_v42, %v186_v41 }
  0x1d   :  { %vm192_vm7 = vcmp.lt.s32.totalorder %v181_v40, %v191_v45  ;;  %p468_p9 = pnand %p467_p8, %p461_p5 }
  0x21   :  { %430 = vmatpush3.bf16.xpose.msk.msra.mxu1 %vm425_vm9, %v428_v3 }
  0xa4   :  { %v122_v31 = vpop.xlane.xlu0 %121 }
  0xa5   :  { %v169_v33 = vrot.slane %v122_v31, %v580_v18  ;;  %v173_v35 = vrot.slane %v122_v31, %v172_v32 }
  0xe9   :  { %v108_v15 = vpop.f32.mrb[0].mxu0 }
  0xea   :  { %v130_v16 = vrot.slane %v108_v15, %v129_v14  ;;  %v408_v17 = vpop.f32.mrb[1].mxu0 }
  0xec   :  { %v131_v19 = vcombine.high %v130_v16, %v130_v16  ;;  %v138_v20 = vrot.slane %v130_v16, %v129_v14 }
  0xee   :  { %v145_v22 = vrot.slane %v131_v19, %v129_v14  ;;  %v149_v23 = vrot.slane %v138_v20, %v580_v18 }
  0xf0   :  { %v156_v25 = vmul.f32 %v149_v23, %v585_v21  ;;  %v153_v26 = vrot.slane %v145_v22, %v580_v18 }
  0xf2   :  { %v159_v27 = vsel %vm158_vm3, %v156_v25, 0.0  ;;  %v157_v28 = vmul.f32 %v153_v26, %v591_v24 }
  0xf3   :  { %160 = vadd.xlane.f32.xlu0 %v159_v27 }
  0xf4   :  { %v162_v29 = vsel %vm158_vm3, %v157_v28, 0.0 }
  0xf5   :  { %163 = vadd.xlane.f32.xlu1 %v162_v29 }
 0x180   :  { %v161_v34 = vpop.xlane.xlu0 %160 }
 0x181   :  { %v176_v36 = vadd.f32 %v169_v33, %v161_v34 }
 0x182   :  { %v164_v37 = vpop.xlane.xlu1 %163 }
 0x183   :  { %v177_v38 = vadd.f32 %v173_v35, %v164_v37  ;;  %196 = vperm.xlu1 %440, %v176_v36  }
 0x185   :  { %199 = vperm.xlu0 %441, %v177_v38  }
 0x202   :  { %v197_v44 = vpop.permute.xlu1 %196 }
 0x203   :  { %v204_v47 = vrot.slane %v197_v44, %v203_v43 }
 0x204   :  { %v200_v46 = vpop.permute.xlu0 %199 }
 0x205   :  { %v208_v48 = vrot.slane %v200_v46, %v203_v43 }
 0x207   :  { %v210_v49 = vsel %vm209_vm6, %v208_v48, %v204_v47 }
 0x208   :  { %v212_v50 = vsel %vm192_vm7, %v210_v49, -1e+08 }
 0x209   :  { %v214_v51 = vsel %vm213_vm8, %v212_v50, -inf }
 0x20a   :  { %215 = vmax.xlane.f32.xlu1 %v214_v51 }
 0x297   :  { %v216_v52 = vpop.xlane.xlu1 %215 }
 0x298   :  { %v217_v53 = vsub.f32 %v212_v50, %v216_v52 }
 0x29a   :  { %v218_v54 = vmul.f32 1.442695, %v217_v53 }
 0x29c   :  { %442 = vpow2.f32 %v218_v54 }
 0x2a6   :  { %v443_v55 = vpop.eup %442 }
 0x2a7   :  { %v220_v56 = vsel %vm213_vm8, %v443_v55, 0.0 }
 0x2a8   :  { %221 = vadd.xlane.f32.xlu0 %v220_v56 }
 0x335   :  { %v222_v57 = vpop.xlane.xlu0 %221 }
 0x336   :  { %444 = vrcp.f32 %v222_v57 }
 0x340   :  { %v445_v61 = vpop.eup %444 }
 0x341   :  { %v224_v62 = vmul.f32 %v445_v61, %v443_v55 }
 0x343   :  { %v228_v1 = vrot.slane %v224_v62, %v580_v18  ;;  %v235_v5 = vrot.slane %v224_v62, %v172_v32 }
 0x345   :  { %230 = vbcast.lane.b32.xlu1 %v228_v1, 256 }
 0x349   :  { %237 = vbcast.lane.b32.xlu1 %v235_v5, 256 }
 0x34d   :  { %258 = vrot.lane.b32.xlu1 %v573_v6, %s516_s20 }
 0x3b7   :  { %v231_v2 = vpop.permute.xlu1 %230 }
 0x3b8   :  { %v239_v7 = vmul.f32 %v231_v2, %v585_v21 }
 0x3ba   :  { %v241_v8 = vsel %vm158_vm3, %v239_v7, 0.0 }
 0x3bb   :  { %v242_v9 = vrot.slane %v241_v8, 4  ;;  %v238_v10 = vpop.permute.xlu1 %237 }
 0x3bc   :  { %v240_v11 = vmul.f32 %v238_v10, %v591_v24 }
 0x3bd   :  { %v243_v12 = vadd.f32 %v242_v9, %v241_v8 }
 0x3be   :  { %v248_v13 = vsel %vm158_vm3, %v240_v11, 0.0 }
 0x3bf   :  { %v244_v14 = vrot.slane %v243_v12, 2  ;;  %v249_v15 = vrot.slane %v248_v13, 4 }
 0x3c1   :  { %v245_v16 = vadd.f32 %v244_v14, %v243_v12  ;;  %v250_v17 = vadd.f32 %v249_v15, %v248_v13 }
 0x3c3   :  { %v251_v18 = vrot.slane %v250_v17, 2  ;;  %v246_v19 = vrot.slane %v245_v16, 1 }
 0x3c5   :  { %v252_v20 = vadd.f32 %v251_v18, %v250_v17  ;;  %v247_v22 = vadd.f32 %v246_v19, %v245_v16 }
 0x3c7   :  { %v253_v6 = vrot.slane %v252_v20, 1 }
 0x3c9   :  { %v254_v23 = vadd.f32 %v253_v6, %v252_v20 }
 0x3cb   :  { %v257_v21 = vsel %vm209_vm6, %v254_v23, %v247_v22 }
 0x3cc   :  { %418 = vmatmul.mubr.msk.f32.vlgmr.msra.gmra.mrb[0].mxu1 %vm158_vm3, %v257_v21 }
 0x3cd   :  { %471 = shalt.err (!%p468_p9)
}
 0x3ce   :  { %s472_s25 = scalar_lea.hbm %s668_s6, 32 }
 0x3cf   :  { %p473_p10 = scmp.ne.s32.totalorder %s668_s6, %s472_s25  ;;  %p476_p11 = scmp.lt.u32.totalorder %s472_s25, %s668_s6 }
 0x3d1   :  { %p478_p12 = pnand %p476_p11, %p473_p10 }
 0x3d3   :  { %481 = shalt.err (!%p478_p12)
}
 0x3d4   :  { %376 = dma.vmem_to_hbm [thread:$0]  %s374_s21, 32, %s668_s6, [#allocation7]   ;;  %v259_v4 = vpop.permute.xlu1 %258 }
 0x3d5   :  { %s348_s7 = sadd.s32 %s602_s11, %s600_s1  ;;  %s518_s4 = smov [#allocation4]  }
 0x3d6   :  { %p349_p13 = scmp.gt.s32.totalorder %s348_s7, 0  ;;  %s363_s9 = sshll.u32 %s518_s4, 4  ;;  %s364_s9 = int_to_ptr.vmem [resolvable:$true] %s363_s9 }
 0x3d7   :  { %s482_s10 = scalar_lea.vmem %s364_s9, 32  ;;  %p487_p1 = scmp.lt.s32.totalorder %s364_s9, %s364_s9 }
 0x3d8   :  { %s350_s8 = scalar_select %p349_p13, 1, 0 }
 0x3d9   :  { %p483_p0 = scmp.ne.s32.totalorder %s364_s9, %s482_s10  ;;  %p488_p2 = scmp.lt.s32.totalorder %s482_s10, %s482_s10 }
 0x3da   :  { %s351_s2 = scvt.s32.f32 %s350_s8 }
 0x3db   :  { %p489_p3 = por %p488_p2, %p487_p1 }
 0x3dc   :  { %v352_v27 = vstv %s351_s2 }
 0x3dd   :  { %p490_p4 = pnand %p489_p3, %p483_p0 }
 0x49f   :  { %v341_v24 = vpop.f32.mrb[0].mxu1 }
 0x4a0   :  { %v342_v25 = vadd.f32 %v341_v24, %v259_v4  ;;  %v419_v26 = vpop.f32.mrb[1].mxu1 }
 0x4a2   :  { %446 = vtanh.f32 %v342_v25 }
 0x4ac   :  { %v447_v28 = vpop.eup %446 }
 0x4ad   :  { %v353_v29 = vmul.f32 %v447_v28, %v352_v27 }
 0x4af   :  { %355 = vst.msk [vmem:[#allocation4] sm:$0x3] %vm354_vm10, %v353_v29 }
 0x4b0   :  { %493 = shalt.err (!%p490_p4)
}
 0x4b1   :  { %s494_s11 = scalar_lea.hbm %s667_s5, 32 }
 0x4b2   :  { %p495_p5 = scmp.ne.s32.totalorder %s667_s5, %s494_s11  ;;  %p498_p6 = scmp.lt.u32.totalorder %s494_s11, %s667_s5 }
 0x4b4   :  { %p500_p7 = pnand %p498_p6, %p495_p5 }
 0x4b6   :  { %503 = shalt.err (!%p500_p7)
}
 0x4b7   :  { %366 = dma.vmem_to_hbm [thread:$0]  %s364_s9, 32, %s667_s5, [#allocation5]  }
 0x4b8   :  { %506 = dma.done.wait [#allocation5], 32  }
 0x4b9   :  { %507 = vsyncadd [#allocation5], 4294967264 }
 0x4ba   :  { %508 = dma.done.wait [#allocation7], 32  }
 0x4bb   :  { %509 = vsyncadd [#allocation7], 4294967264 }
 0x4bc   :  { %383 = vsyncpa [#allocation5], 1 }
 0x4bd   :  { %384 = vsyncpa [#allocation7], 1 }

</bundles_post_ra>
